<compile_context>
chip_gen: v5e
topology: v5e:2x2
jax: 0.10.0
libtpu: 0.0.40
codegen_flags: <defaults>
</compile_context>

<pallas_src>
import jax
import jax.numpy as jnp
from jax.experimental import pallas as pl
from jax.experimental.pallas import tpu as pltpu


def _round_up(n, m):
    return ((n + m - 1) // m) * m


def _cdiv(a, b):
    return (a + b - 1) // b


def value_net_kernel(x_ref, w1_ref, b1_ref, w2_ref, b2_ref, o_ref):
    """One batch tile of: relu(x @ W1 + b1) . w2 + b2.

    x_ref : (TILE_B, D) f32    -- per-grid-step batch tile (streamed)
    w1_ref: (D, H)      bf16   -- VMEM-resident across the grid
    b1_ref: (1, H)      f32    -- VMEM-resident
    w2_ref: (1, H)      f32    -- VMEM-resident (second-layer weight as a row)
    b2_ref: (1, 1)      f32    -- SMEM scalar
    o_ref : (TILE_B, 1) f32
    """
    # Cast on the VPU (free slot) instead of a wrapper-side HBM pass over x.
    x_bf = x_ref[...].astype(jnp.bfloat16)
    # Layer 1: MXU matmul, f32 accumulation; bias + ReLU in f32 on the VPU.
    h = jnp.dot(x_bf, w1_ref[...], preferred_element_type=jnp.float32)
    h = jnp.maximum(h + b1_ref[...], 0.0)
    # Layer 2 (output width 1): VPU multiply + XLU lane reduction instead of an
    # N=1 MXU matmul that would occupy a single MXU output column.
    out = jnp.sum(h * w2_ref[...], axis=-1, keepdims=True) + b2_ref[0, 0]
    o_ref[...] = out.astype(o_ref.dtype)


def value_network_forward(x, w1, b1, w2, b2, *, tile_b=4096):
    """x: (B, D) f32; w1: (D, 128); b1: (1, 128); w2: (128, 1); b2: (1, 1)."""
    B, D = x.shape
    H = w1.shape[1]

    # ---- operand prep (weights only; x is untouched -- no extra HBM pass) --
    x_f32 = jnp.asarray(x, jnp.float32)
    w1_bf = jnp.asarray(w1, jnp.float32).astype(jnp.bfloat16)   # tiny, one-time
    b1_r = jnp.asarray(b1, jnp.float32).reshape(1, H)
    w2_r = jnp.asarray(w2, jnp.float32).reshape(1, H)           # row for mul+reduce
    b2_r = jnp.asarray(b2, jnp.float32).reshape(1, 1)

    # ---- grid shaping (no x padding: last block is a partial edge block) ---
    tile_b = max(8, _round_up(min(tile_b, _round_up(B, 8)), 8))
    num_tiles = _cdiv(B, tile_b)
    if num_tiles > 1 and num_tiles % 2 == 1:
        # Even number of grid steps so v7x's two TensorCores split evenly.
        num_tiles += 1
        tile_b = max(8, _round_up(_cdiv(B, num_tiles), 8))
        num_tiles = _cdiv(B, tile_b)
    grid = (num_tiles,)

    # ---- VMEM budget (lane/sublane padded, double-buffered x/out) ----------
    lanes = 128
    d_lane = _round_up(D, lanes)
    h_lane = _round_up(H, lanes)
    x_tile_bytes = tile_b * d_lane * 4                    # streamed f32 tile
    o_tile_bytes = tile_b * lanes * 4
    weight_bytes = _round_up(D, 16) * h_lane * 2 + 2 * 8 * h_lane * 4
    scratch_bytes = tile_b * h_lane * 4 + tile_b * d_lane * 2  # h (f32) + x bf16 cast
    need = 2 * (x_tile_bytes + o_tile_bytes) + 2 * weight_bytes + scratch_bytes + (8 << 20)
    try:
        vmem_cap = pltpu.get_tpu_info().vmem_capacity_bytes
    except Exception:
        vmem_cap = 128 << 20
    # Leave ~12 MiB headroom below physical VMEM for Mosaic internal scratch
    # (52 MiB cap on v7x, ~116 MiB on v5e/v6e); never below 16 MiB.
    vmem_bytes = int(max(min(need, vmem_cap - (12 << 20)), 16 << 20))

    cost = pl.CostEstimate(
        flops=2 * B * D * H + 3 * B * H,
        transcendentals=0,
        bytes_accessed=B * D * 4 + D * H * 2 + 2 * H * 4 + 4 + B * 4,
    )

    out = pl.pallas_call(
        value_net_kernel,
        out_shape=jax.ShapeDtypeStruct((B, 1), jnp.float32),
        grid=grid,
        in_specs=[
            pl.BlockSpec((tile_b, D), lambda i: (i, 0)),        # x tile: streamed
            pl.BlockSpec((D, H), lambda i: (0, 0)),             # W1: resident
            pl.BlockSpec((1, H), lambda i: (0, 0)),             # b1: resident
            pl.BlockSpec((1, H), lambda i: (0, 0)),             # w2 row: resident
            pl.BlockSpec(memory_space=pltpu.MemorySpace.SMEM),  # b2 scalar
        ],
        out_specs=pl.BlockSpec((tile_b, 1), lambda i: (i, 0)),
        compiler_params=pltpu.CompilerParams(
            dimension_semantics=("parallel",),   # megacore split on v7x; no-op on v5e/v6e
            vmem_limit_bytes=vmem_bytes,
        ),
        cost_estimate=cost,
    )(x_f32, w1_bf, b1_r, w2_r, b2_r)

    return out


def init_params(key, input_size, hidden=128):
    """Deterministic init matching nn.Linear defaults: U(-1/sqrt(fan_in), 1/sqrt(fan_in))."""
    k1, k2, k3, k4 = jax.random.split(key, 4)
    bound1 = 1.0 / jnp.sqrt(float(input_size))
    bound2 = 1.0 / jnp.sqrt(float(hidden))
    w1 = jax.random.uniform(k1, (input_size, hidden), jnp.float32, -bound1, bound1)
    b1 = jax.random.uniform(k2, (1, hidden), jnp.float32, -bound1, bound1)
    w2 = jax.random.uniform(k3, (hidden, 1), jnp.float32, -bound2, bound2)
    b2 = jax.random.uniform(k4, (1, 1), jnp.float32, -bound2, bound2)
    return w1, b1, w2, b2


if __name__ == "__main__":
    key = jax.random.PRNGKey(0)
    kx, kp, kx2 = jax.random.split(key, 3)

    input_size = 16
    w1, b1, w2, b2 = init_params(kp, input_size)

    def reference(xx):
        # Reference mirrors the kernel's bf16 layer-1 inputs / f32 accumulation.
        xb = xx.astype(jnp.bfloat16).astype(jnp.float32)
        w1b = w1.astype(jnp.bfloat16).astype(jnp.float32)
        h = jnp.maximum(xb @ w1b + b1, 0.0)
        return h @ w2 + b2

    # Small PPO inference-style shape (single grid step, full-array block).
    x_small = jax.random.normal(kx, (8, input_size), jnp.float32)
    out_small = jax.block_until_ready(value_network_forward(x_small, w1, b1, w2, b2))
    assert out_small.shape == (8, 1)
    assert jnp.allclose(out_small, reference(x_small), atol=1e-3, rtol=1e-3)

    # Larger, non-tile-multiple batch: exercises a multi-step even grid with a
    # partial (edge) final block and no wrapper-side padding of x.
    x_big = jax.random.normal(kx2, (300, input_size), jnp.float32)
    out_big = jax.block_until_ready(
        value_network_forward(x_big, w1, b1, w2, b2, tile_b=128))
    assert out_big.shape == (300, 1)
    assert jnp.allclose(out_big, reference(x_big), atol=1e-3, rtol=1e-3)

    print("KERNEL_OK")
</pallas_src>

<mosaic_0001>
module attributes {stable_mosaic.version = 11 : i64} {
  func.func @value_net_kernel(%arg0: i32, %arg1: memref<8x16xf32, #tpu.memory_space<vmem>>, %arg2: memref<16x128xbf16, #tpu.memory_space<vmem>>, %arg3: memref<1x128xf32, #tpu.memory_space<vmem>>, %arg4: memref<1x128xf32, #tpu.memory_space<vmem>>, %arg5: memref<1x1xf32, #tpu.memory_space<smem>>, %arg6: memref<8x1xf32, #tpu.memory_space<vmem>>) attributes {dimension_semantics = [#tpu.dimension_semantics<parallel>], iteration_bounds = array<i64: 1>, scalar_prefetch = 0 : i64, scratch_operands = 0 : i64, tpu.core_type = #tpu.core_type<tc>, window_params = [{transform_indices = @transform_0, window_bounds = array<i64: 8, 16>}, {pipeline_mode = #tpu.pipeline_mode<synchronous>, transform_indices = @transform_1, window_bounds = array<i64: 16, 128>}, {pipeline_mode = #tpu.pipeline_mode<synchronous>, transform_indices = @transform_2, window_bounds = array<i64: 1, 128>}, {pipeline_mode = #tpu.pipeline_mode<synchronous>, transform_indices = @transform_3, window_bounds = array<i64: 1, 128>}, {transform_indices = @transform_4, window_bounds = array<i64: 1, 1>}, {transform_indices = @transform_5, window_bounds = array<i64: 8, 1>}]} {
    %c0 = arith.constant 0 : index
    %c0_0 = arith.constant 0 : index
    %0 = vector.load %arg1[%c0, %c0_0] : memref<8x16xf32, #tpu.memory_space<vmem>>, vector<8x16xf32>
    %1 = arith.truncf %0 : vector<8x16xf32> to vector<8x16xbf16>
    %c0_1 = arith.constant 0 : index
    %c0_2 = arith.constant 0 : index
    %2 = vector.load %arg2[%c0_1, %c0_2] : memref<16x128xbf16, #tpu.memory_space<vmem>>, vector<16x128xbf16>
    %cst = arith.constant dense<0.000000e+00> : vector<8x128xf32>
    %3 = tpu.matmul %1, %2, %cst {dimension_numbers = #tpu.dot_dimension_numbers<[1], [0], [0], [1], [0, 0, 1, 1], [], []>} : vector<8x16xbf16>, vector<16x128xbf16>, vector<8x128xf32> -> vector<8x128xf32>
    %c0_3 = arith.constant 0 : index
    %c0_4 = arith.constant 0 : index
    %4 = vector.load %arg3[%c0_3, %c0_4] : memref<1x128xf32, #tpu.memory_space<vmem>>, vector<1x128xf32>
    %5 = vector.broadcast %4 : vector<1x128xf32> to vector<8x128xf32>
    %6 = arith.addf %3, %5 : vector<8x128xf32>
    %cst_5 = arith.constant 0.000000e+00 : f32
    %7 = vector.broadcast %cst_5 : f32 to vector<8x128xf32>
    %8 = arith.maximumf %6, %7 : vector<8x128xf32>
    %c0_6 = arith.constant 0 : index
    %c0_7 = arith.constant 0 : index
    %9 = vector.load %arg4[%c0_6, %c0_7] : memref<1x128xf32, #tpu.memory_space<vmem>>, vector<1x128xf32>
    %10 = vector.broadcast %9 : vector<1x128xf32> to vector<8x128xf32>
    %11 = arith.mulf %8, %10 : vector<8x128xf32>
    %cst_8 = arith.constant dense<0.000000e+00> : vector<8xf32>
    %12 = vector.multi_reduction <add>, %11, %cst_8 [1] : vector<8x128xf32> to vector<8xf32>
    %13 = vector.shape_cast %12 : vector<8xf32> to vector<8x1xf32>
    %c0_9 = arith.constant 0 : index
    %c0_10 = arith.constant 0 : index
    %14 = memref.load %arg5[%c0_9, %c0_10] : memref<1x1xf32, #tpu.memory_space<smem>>
    %15 = vector.broadcast %14 : f32 to vector<8x1xf32>
    %16 = arith.addf %13, %15 : vector<8x1xf32>
    %c0_11 = arith.constant 0 : index
    %c0_12 = arith.constant 0 : index
    %17 = vector.load %arg6[%c0_11, %c0_12] : memref<8x1xf32, #tpu.memory_space<vmem>>, vector<8x1xf32>
    tpu.vector_store %arg6[%c0_11, %c0_12], %16 {strides = array<i32>} : memref<8x1xf32, #tpu.memory_space<vmem>>, vector<8x1xf32>,
    return
  }
  func.func @transform_0(%arg0: i32) -> (i32, i32) {
    %c0_i32 = arith.constant 0 : i32
    %c0_i32_0 = arith.constant 0 : i32
    return %arg0, %c0_i32 : i32, i32
  }
  func.func @transform_1(%arg0: i32) -> (i32, i32) {
    %c0_i32 = arith.constant 0 : i32
    %c0_i32_0 = arith.constant 0 : i32
    %c0_i32_1 = arith.constant 0 : i32
    return %c0_i32, %c0_i32_0 : i32, i32
  }
  func.func @transform_2(%arg0: i32) -> (i32, i32) {
    %c0_i32 = arith.constant 0 : i32
    %c0_i32_0 = arith.constant 0 : i32
    %c0_i32_1 = arith.constant 0 : i32
    return %c0_i32, %c0_i32_0 : i32, i32
  }
  func.func @transform_3(%arg0: i32) -> (i32, i32) {
    %c0_i32 = arith.constant 0 : i32
    %c0_i32_0 = arith.constant 0 : i32
    %c0_i32_1 = arith.constant 0 : i32
    return %c0_i32, %c0_i32_0 : i32, i32
  }
  func.func @transform_4(%arg0: i32) -> (i32, i32) {
    %c0_i32 = arith.constant 0 : i32
    %c0_i32_0 = arith.constant 0 : i32
    %c0_i32_1 = arith.constant 0 : i32
    return %c0_i32, %c0_i32_0 : i32, i32
  }
  func.func @transform_5(%arg0: i32) -> (i32, i32) {
    %c0_i32 = arith.constant 0 : i32
    %c0_i32_0 = arith.constant 0 : i32
    return %arg0, %c0_i32 : i32, i32
  }
}

</mosaic_0001>

<bundles_post_ra>
// kernel: tpu_custom_call.1
= control target key start
LH: loop header
LB: loop body
LE: loop exit
PB: predicated region body
PF: predicated region fallthrough
CT: control target
= control target key end

     0   :  { %11 = vsyncpa [#allocation4], 0  ;;  %s218_s0 = inlined_call_operand.hbm [shape: f32[8,16], index: 0, kind: input, shape index: {}]   ;;  %s219_s1 = inlined_call_operand.hbm [shape: bf16[16,128], index: 1, kind: input, shape index: {}]   ;;  %s220_s2 = inlined_call_operand.vmem [shape: f32[1,128], index: 2, kind: input, shape index: {}]   ;;  %s221_s3 = inlined_call_operand.vmem [shape: f32[1,128], index: 3, kind: input, shape index: {}]   ;;  %s222_s4 = inlined_call_operand.<no memory space> [shape: f32[1,1], index: 4, kind: input, shape index: {}]   ;;  %s223_s5 = inlined_call_operand.vmem [shape: f32[8,1], index: 5, kind: output, shape index: {}]  }
   0x1   :  { %s18_s20 = sshll.u32 %s218_s0, 4  ;;  %s19_s20 = int_to_ptr.hbm [resolvable:$true] %s18_s20 }
   0x2   :  { %12 = vsyncpa [#allocation6], 0  ;;  %s166_s21 = smov [#allocation3]   ;;  %s28_s25 = sshll.u32 %s219_s1, 4  ;;  %s29_s25 = int_to_ptr.hbm [resolvable:$true] %s28_s25 }
   0x3   :  { %s20_s22 = sshll.u32 %s166_s21, 4  ;;  %s167_s26 = smov [#allocation5]   ;;  %s21_s22 = int_to_ptr.vmem [resolvable:$true] %s20_s22 }
   0x4   :  { %23 = dma.hbm_to_vmem [thread:$0]  %s19_s20, 128, %s21_s22, [#allocation4]  }
   0x5   :  { %s30_s27 = sshll.u32 %s167_s26, 4  ;;  %s168_s28 = smov 64   ;;  %s31_s27 = int_to_ptr.vmem [resolvable:$true] %s30_s27 }
   0x6   :  { %s169_s29 = smov 4  }
   0x7   :  { %36 = dma.hbm_to_vmem [thread:$0]  %s29_s25, 128, %s31_s27, [#allocation6], %s168_s28, %s168_s28, %s169_s29  }
   0x8   :  { %162 = dma.done.wait [#allocation4], 128  }
   0x9   :  { %163 = vsyncadd [#allocation4], 4294967168 }
   0xa   :  { %164 = dma.done.wait [#allocation6], 128  }
   0xb   :  { %165 = vsyncadd [#allocation6], 4294967168  ;;  %v107_v0 = vld [vmem:[#allocation5] sm:$0xff]  ;;  %v52_v1 = vld [vmem:[#allocation3] sm:$0xff]  ;;  %vm66_vm0 = vcmask 130048   ;;  %v92_v10 = vstv %s222_s4  ;;  %vm94_vm1 = vcmask 7168  }
   0xc   :  { %v53_v2 = vpack.c.bf16 %v52_v1, %v52_v1  ;;  %77 = vmatpush.bf16.msra.mxu0 %v107_v0  ;;  %v112_v3 = vld [vmem:[%s220_s2] ss:$0 sm:$0xff] }
   0xd   :  { %v113_v6 = vld [vmem:[%s221_s3] ss:$0 sm:$0xff] }
   0xf   :  { %106 = vmatmul.msk.bf16.vlgmr.msra.gmra.mxu0 %vm66_vm0, %v53_v2 }
  0x8c   :  { %v79_v4 = vpop.f32.mrf.mxu0 }
  0x8d   :  { %v80_v5 = vadd.f32 %v112_v3, %v79_v4 }
  0x8f   :  { %v83_v7 = vmax.f32 %v80_v5, 0.0 }
  0x91   :  { %v88_v8 = vmul.f32 %v113_v6, %v83_v7 }
  0x93   :  { %89 = vadd.xlane.f32.xlu0 %v88_v8 }
  0x94   :  { %v81_v9 = vpop.f32.mrf.mxu0 }
 0x106   :  { %v90_v11 = vpop.xlane.xlu0 %89 }
 0x107   :  { %v93_v12 = vadd.f32 %v92_v10, %v90_v11 }
 0x109   :  { %95 = vst.msk [vmem:[%s223_s5] sm:$0xff] %vm94_vm1, %v93_v12 }
 0x10a   :  { %100 = vsyncpa [#allocation4], 1 }
 0x10b   :  { %101 = vsyncpa [#allocation6], 1 }

</bundles_post_ra>
